<compile_context>
chip_gen: v7x
topology: tpu7x:2x2x1
jax: 0.10.0
libtpu: 0.0.40
codegen_flags: <defaults>
</compile_context>

<pallas_src>
import functools

import jax
import jax.numpy as jnp
from jax.experimental import pallas as pl
from jax.experimental.pallas import tpu as pltpu

P_VALUE = 1e-8
LANES = 128


def _gumbel_sigmoid_kernel(x_ref, ux_ref, ur_ref, o_ref, *, inv_t, compute_dtype):
    """One (C, rows, 128) block of spatial positions for one batch element.

    PyTorch 4-D branch semantics:
      g  = -log(-log(U + eps) + eps),  U ~ Uniform[0,1)
      zx = (log(x + eps)     + g_x) * 1/(T + eps)
      zr = (log(1 - x + eps) + g_r) * 1/(T + eps)
      out = softmax(concat([zx, zr], channel))[channel 0]
    """
    eps = P_VALUE
    cdt = compute_dtype

    x = x_ref[...].astype(cdt)        # (C, rows, 128)
    ux = ux_ref[...].astype(cdt)
    ur = ur_ref[...].astype(cdt)

    # Gumbel noise (2 logs per draw).
    gx = -jnp.log(-jnp.log(ux + eps) + eps)
    gr = -jnp.log(-jnp.log(ur + eps) + eps)

    # Temperature divide folded into a trace-time constant multiply.
    zx = (jnp.log(x + eps) + gx) * inv_t
    zr = (jnp.log((1.0 - x) + eps) + gr) * inv_t

    # Numerically stable softmax over the concatenated 2C channels.  The
    # channel axis is the leading (vreg-count) dim, so max/sum are elementwise
    # VPU trees across C vreg-arrays — no cross-sublane XLU traffic.
    m = jnp.max(jnp.maximum(zx, zr), axis=0, keepdims=True)   # (1, rows, 128)
    ex = jnp.exp(zx - m)                                       # (C, rows, 128)
    er = jnp.exp(zr - m)
    # Fused denominator, accumulated in f32.
    denom = jnp.sum((ex + er).astype(jnp.float32), axis=0)     # (rows, 128)

    o_ref[...] = ex[0].astype(jnp.float32) / denom             # channel 0 only


def _bf16_transcendentals_ok():
    """bf16 EUP/VPU exist on v6e/v7x only; keep f32 elsewhere (v5e, interpret)."""
    try:
        if jax.default_backend() != "tpu":
            return False
        kind = jax.devices()[0].device_kind.lower()
    except Exception:
        return False
    return ("v6" in kind) or ("v7" in kind) or ("6e" in kind) or ("7x" in kind)


def _pick_row_tile(rows, C):
    """Rows-of-128-lanes per block: multiple of 8 (sublane-dense), ~512 KiB
    f32 input block, and >=2 row-steps when possible (v7x 2nd TensorCore)."""
    if rows <= 8:
        return rows
    budget = max(8, (512 * 1024) // (4 * C * LANES))
    tile = min(rows, budget)
    tile = max(8, (tile // 8) * 8)
    if tile == rows and rows >= 16:
        tile = max(8, (((rows + 1) // 2) // 8) * 8)
    return tile


def gumbel_sigmoid(x_nchw, noise_key, *, max_T=1.0, decay_alpha=0.998,
                   training=False):
    """JAX/Pallas equivalent of MyGumbelSigmoid.forward for 4-D NCHW inputs."""
    del decay_alpha
    # TODO(synk): training-mode `cur_T *= decay_alpha` is a stateful buffer
    # update in the PyTorch module; thread the current temperature explicitly.
    temperature = float(max_T) if training else 0.03
    inv_t = 1.0 / (temperature + P_VALUE)                      # trace-time const

    N, C, H, W = x_nchw.shape
    HW = H * W

    x = x_nchw
    if x.dtype != jnp.float32:
        x = x.astype(jnp.float32)

    # Fold the flattened spatial axis into (rows, 128) lanes, padded to a
    # multiple of the row tile so every store is a full, unmasked vreg slab.
    rows = pl.cdiv(HW, LANES)
    r_tile = _pick_row_tile(rows, C)
    rows_pad = pl.cdiv(rows, r_tile) * r_tile
    hw_pad = rows_pad * LANES

    xf = x.reshape(N, C, HW)
    if hw_pad != HW:
        xf = jnp.pad(xf, ((0, 0), (0, 0), (0, hw_pad - HW)))
    x4 = xf.reshape(N, C, rows_pad, LANES)

    # Uniform noise, same layout as x (portable replacement for the in-kernel
    # hardware PRNG, which has no lowering outside Mosaic).
    kx, kr = jax.random.split(noise_key)
    ux = jax.random.uniform(kx, x4.shape, dtype=jnp.float32)
    ur = jax.random.uniform(kr, x4.shape, dtype=jnp.float32)

    compute_dtype = jnp.bfloat16 if _bf16_transcendentals_ok() else jnp.float32
    kernel = functools.partial(_gumbel_sigmoid_kernel, inv_t=inv_t,
                               compute_dtype=compute_dtype)

    grid = (N, rows_pad // r_tile)
    in_spec = pl.BlockSpec((None, C, r_tile, LANES), lambda n, r: (n, 0, r, 0))

    out = pl.pallas_call(
        kernel,
        out_shape=jax.ShapeDtypeStruct((N, rows_pad, LANES), jnp.float32),
        grid=grid,
        in_specs=[in_spec, in_spec, in_spec],
        out_specs=pl.BlockSpec((None, r_tile, LANES), lambda n, r: (n, r, 0)),
        compiler_params=pltpu.CompilerParams(
            dimension_semantics=("parallel", "parallel"),
            vmem_limit_bytes=32 * 1024 * 1024),
    )(x4, ux, ur)

    out = out.reshape(N, hw_pad)[:, :HW].reshape(N, 1, H, W)
    return out
    # TODO(synk): the PyTorch module's <=3-D input branch (softmax over the
    # doubled last dim) is not implemented here; only the 4-D NCHW path is.


if __name__ == "__main__":
    key = jax.random.PRNGKey(0)
    kx, kn = jax.random.split(key)

    # x is probability-like (the module expects values in [0, 1]).
    x = jax.random.uniform(kx, (2, 4, 16, 16), dtype=jnp.float32)

    out = gumbel_sigmoid(x, kn, max_T=1.0, decay_alpha=0.998, training=False)
    out = jax.block_until_ready(out)

    assert out.shape == (2, 1, 16, 16), out.shape
    assert bool(jnp.all(jnp.isfinite(out)))
    # Softmax probability over the 2C concatenated channels.
    assert bool(jnp.all((out >= 0.0) & (out <= 1.0 + 1e-6)))

    print("KERNEL_OK")
</pallas_src>

<mosaic_0001>
module attributes {stable_mosaic.version = 11 : i64} {
  func.func @_gumbel_sigmoid_kernel(%arg0: i32, %arg1: i32, %arg2: memref<1x4x2x128xf32, #tpu.memory_space<vmem>>, %arg3: memref<1x4x2x128xf32, #tpu.memory_space<vmem>>, %arg4: memref<1x4x2x128xf32, #tpu.memory_space<vmem>>, %arg5: memref<1x2x128xf32, #tpu.memory_space<vmem>>) attributes {dimension_semantics = [#tpu.dimension_semantics<parallel>, #tpu.dimension_semantics<parallel>], iteration_bounds = array<i64: 2, 1>, scalar_prefetch = 0 : i64, scratch_operands = 0 : i64, tpu.core_type = #tpu.core_type<tc>, window_params = [{transform_indices = @transform_0, window_bounds = array<i64: 1, 4, 2, 128>}, {transform_indices = @transform_1, window_bounds = array<i64: 1, 4, 2, 128>}, {transform_indices = @transform_2, window_bounds = array<i64: 1, 4, 2, 128>}, {transform_indices = @transform_3, window_bounds = array<i64: 1, 2, 128>}]} {
    %c0 = arith.constant 0 : index
    %c0_0 = arith.constant 0 : index
    %c0_1 = arith.constant 0 : index
    %c0_2 = arith.constant 0 : index
    %0 = vector.load %arg2[%c0, %c0_0, %c0_1, %c0_2] : memref<1x4x2x128xf32, #tpu.memory_space<vmem>>, vector<1x4x2x128xf32>
    %1 = vector.shape_cast %0 : vector<1x4x2x128xf32> to vector<4x2x128xf32>
    %c0_3 = arith.constant 0 : index
    %c0_4 = arith.constant 0 : index
    %c0_5 = arith.constant 0 : index
    %c0_6 = arith.constant 0 : index
    %2 = vector.load %arg3[%c0_3, %c0_4, %c0_5, %c0_6] : memref<1x4x2x128xf32, #tpu.memory_space<vmem>>, vector<1x4x2x128xf32>
    %3 = vector.shape_cast %2 : vector<1x4x2x128xf32> to vector<4x2x128xf32>
    %c0_7 = arith.constant 0 : index
    %c0_8 = arith.constant 0 : index
    %c0_9 = arith.constant 0 : index
    %c0_10 = arith.constant 0 : index
    %4 = vector.load %arg4[%c0_7, %c0_8, %c0_9, %c0_10] : memref<1x4x2x128xf32, #tpu.memory_space<vmem>>, vector<1x4x2x128xf32>
    %5 = vector.shape_cast %4 : vector<1x4x2x128xf32> to vector<4x2x128xf32>
    %cst = arith.constant 9.99999993E-9 : f32
    %6 = vector.broadcast %cst : f32 to vector<4x2x128xf32>
    %7 = arith.addf %3, %6 : vector<4x2x128xf32>
    %8 = math.log %7 : vector<4x2x128xf32>
    %cst_11 = arith.constant 0.000000e+00 : f32
    %9 = vector.broadcast %cst_11 : f32 to vector<4x2x128xf32>
    %10 = arith.subf %9, %8 : vector<4x2x128xf32>
    %cst_12 = arith.constant 9.99999993E-9 : f32
    %11 = vector.broadcast %cst_12 : f32 to vector<4x2x128xf32>
    %12 = arith.addf %10, %11 : vector<4x2x128xf32>
    %13 = math.log %12 : vector<4x2x128xf32>
    %cst_13 = arith.constant 0.000000e+00 : f32
    %14 = vector.broadcast %cst_13 : f32 to vector<4x2x128xf32>
    %15 = arith.subf %14, %13 : vector<4x2x128xf32>
    %cst_14 = arith.constant 9.99999993E-9 : f32
    %16 = vector.broadcast %cst_14 : f32 to vector<4x2x128xf32>
    %17 = arith.addf %5, %16 : vector<4x2x128xf32>
    %18 = math.log %17 : vector<4x2x128xf32>
    %cst_15 = arith.constant 0.000000e+00 : f32
    %19 = vector.broadcast %cst_15 : f32 to vector<4x2x128xf32>
    %20 = arith.subf %19, %18 : vector<4x2x128xf32>
    %cst_16 = arith.constant 9.99999993E-9 : f32
    %21 = vector.broadcast %cst_16 : f32 to vector<4x2x128xf32>
    %22 = arith.addf %20, %21 : vector<4x2x128xf32>
    %23 = math.log %22 : vector<4x2x128xf32>
    %cst_17 = arith.constant 0.000000e+00 : f32
    %24 = vector.broadcast %cst_17 : f32 to vector<4x2x128xf32>
    %25 = arith.subf %24, %23 : vector<4x2x128xf32>
    %cst_18 = arith.constant 9.99999993E-9 : f32
    %26 = vector.broadcast %cst_18 : f32 to vector<4x2x128xf32>
    %27 = arith.addf %1, %26 : vector<4x2x128xf32>
    %28 = math.log %27 : vector<4x2x128xf32>
    %29 = arith.addf %28, %15 : vector<4x2x128xf32>
    %cst_19 = arith.constant 33.3333206 : f32
    %30 = vector.broadcast %cst_19 : f32 to vector<4x2x128xf32>
    %31 = arith.mulf %29, %30 : vector<4x2x128xf32>
    %cst_20 = arith.constant 1.000000e+00 : f32
    %32 = vector.broadcast %cst_20 : f32 to vector<4x2x128xf32>
    %33 = arith.subf %32, %1 : vector<4x2x128xf32>
    %cst_21 = arith.constant 9.99999993E-9 : f32
    %34 = vector.broadcast %cst_21 : f32 to vector<4x2x128xf32>
    %35 = arith.addf %33, %34 : vector<4x2x128xf32>
    %36 = math.log %35 : vector<4x2x128xf32>
    %37 = arith.addf %36, %25 : vector<4x2x128xf32>
    %cst_22 = arith.constant 33.3333206 : f32
    %38 = vector.broadcast %cst_22 : f32 to vector<4x2x128xf32>
    %39 = arith.mulf %37, %38 : vector<4x2x128xf32>
    %40 = arith.maximumf %31, %39 : vector<4x2x128xf32>
    %cst_23 = arith.constant dense<0xFF800000> : vector<2x128xf32>
    %41 = vector.multi_reduction <maximumf>, %40, %cst_23 [0] : vector<4x2x128xf32> to vector<2x128xf32>
    %42 = vector.shape_cast %41 : vector<2x128xf32> to vector<1x2x128xf32>
    %43 = vector.broadcast %42 : vector<1x2x128xf32> to vector<4x2x128xf32>
    %44 = arith.subf %31, %43 : vector<4x2x128xf32>
    %45 = math.exp %44 : vector<4x2x128xf32>
    %46 = vector.broadcast %42 : vector<1x2x128xf32> to vector<4x2x128xf32>
    %47 = arith.subf %39, %46 : vector<4x2x128xf32>
    %48 = math.exp %47 : vector<4x2x128xf32>
    %49 = arith.addf %45, %48 : vector<4x2x128xf32>
    %cst_24 = arith.constant dense<0.000000e+00> : vector<2x128xf32>
    %50 = vector.multi_reduction <add>, %49, %cst_24 [0] : vector<4x2x128xf32> to vector<2x128xf32>
    %51 = vector.extract_strided_slice %45 {offsets = [0, 0, 0], sizes = [1, 2, 128], strides = [1, 1, 1]} : vector<4x2x128xf32> to vector<1x2x128xf32>
    %52 = vector.shape_cast %51 : vector<1x2x128xf32> to vector<2x128xf32>
    %53 = arith.divf %52, %50 : vector<2x128xf32>
    %c0_25 = arith.constant 0 : index
    %c0_26 = arith.constant 0 : index
    %c0_27 = arith.constant 0 : index
    %54 = vector.load %arg5[%c0_25, %c0_26, %c0_27] : memref<1x2x128xf32, #tpu.memory_space<vmem>>, vector<1x2x128xf32>
    %55 = vector.shape_cast %54 : vector<1x2x128xf32> to vector<2x128xf32>
    %56 = vector.shape_cast %53 : vector<2x128xf32> to vector<1x2x128xf32>
    tpu.vector_store %arg5[%c0_25, %c0_26, %c0_27], %56 {strides = array<i32>} : memref<1x2x128xf32, #tpu.memory_space<vmem>>, vector<1x2x128xf32>,
    return
  }
  func.func @transform_0(%arg0: i32, %arg1: i32) -> (i32, i32, i32, i32) {
    %c0_i32 = arith.constant 0 : i32
    %c0_i32_0 = arith.constant 0 : i32
    %c0_i32_1 = arith.constant 0 : i32
    return %arg0, %c0_i32, %arg1, %c0_i32_0 : i32, i32, i32, i32
  }
  func.func @transform_1(%arg0: i32, %arg1: i32) -> (i32, i32, i32, i32) {
    %c0_i32 = arith.constant 0 : i32
    %c0_i32_0 = arith.constant 0 : i32
    %c0_i32_1 = arith.constant 0 : i32
    return %arg0, %c0_i32, %arg1, %c0_i32_0 : i32, i32, i32, i32
  }
  func.func @transform_2(%arg0: i32, %arg1: i32) -> (i32, i32, i32, i32) {
    %c0_i32 = arith.constant 0 : i32
    %c0_i32_0 = arith.constant 0 : i32
    %c0_i32_1 = arith.constant 0 : i32
    return %arg0, %c0_i32, %arg1, %c0_i32_0 : i32, i32, i32, i32
  }
  func.func @transform_3(%arg0: i32, %arg1: i32) -> (i32, i32, i32) {
    %c0_i32 = arith.constant 0 : i32
    %c0_i32_0 = arith.constant 0 : i32
    return %arg0, %arg1, %c0_i32 : i32, i32, i32
  }
}

</mosaic_0001>

<bundles_post_ra>
// kernel: tpu_custom_call.1
= control target key start
LH: loop header
LB: loop body
LE: loop exit
PB: predicated region body
PF: predicated region fallthrough
CT: control target
= control target key end

     0   :  { %s1262_s0 = inlined_call_operand.hbm [shape: f32[2,4,2,128], index: 0, kind: input, shape index: {}]   ;;  %s1263_s1 = inlined_call_operand.hbm [shape: f32[2,4,2,128], index: 1, kind: input, shape index: {}]   ;;  %s1264_s2 = inlined_call_operand.hbm [shape: f32[2,4,2,128], index: 2, kind: input, shape index: {}]   ;;  %s1265_s3 = inlined_call_operand.hbm [shape: f32[2,2,128], index: 3, kind: output, shape index: {}]  }
   0x1   :  { %1275 = sst [smem:[#allocation15_spill]] %s1263_s1 }
   0x2   :  { %8 = vsyncpa [#allocation3], 0 }
   0x3   :  { %10 = vsyncpa [#allocation3 + $0x1], 0 }
   0x4   :  { %11 = vsyncpa [#allocation6], 0 }
   0x5   :  { %13 = vsyncpa [#allocation6 + $0x1], 0 }
   0x6   :  { %14 = vsyncpa [#allocation4], 0 }
   0x7   :  { %16 = vsyncpa [#allocation4 + $0x1], 0  ;;  %s971_s12 = smov 0   ;;  %s973_s13 = smov 0  }
   0x8   :  { %s975_s14 = smov 0   ;;  %s977_s15 = smov 0  }
   0x9   :  { %s979_s16 = smov 0   ;;  %s981_s17 = smov 0  }
   0xa LB: > { %1276 = sst [smem:[#allocation12_spill]] %s939_s16  ;;  %s1002_s18 = sadd.s32 4294967295, %s943_s17   ;;  %s943_s17 = sphi %s981_s17, %s22_s17   ;;  %s939_s16 = sphi %s979_s16, %s1299_s16   ;;  %s935_s15 = sphi %s977_s15, %s1298_s15   ;;  %s931_s14 = sphi %s975_s14, %s1302_s14   ;;  %s927_s13 = sphi %s973_s13, %s1301_s13   ;;  %s923_s12 = sphi %s971_s12, %s1300_s12  }
   0xb   : > { %s603_s19 = sadd.s32 4294967294, %s943_s17   ;;  %s34_s20 = sadd.s32 1, %s939_s16 }
   0xc   : > { %s43_s21 = sadd.s32 1, %s931_s14  ;;  %p36_p0 = scmp.ge.s32.totalorder %s34_s20, 2 }
   0xd   : > { %p50_p1 = scmp.ne.s32.totalorder %s931_s14, %s927_s13  ;;  %p51_p2 = scmp.eq.s32.totalorder %s943_s17, 0 }
   0xe   : > { %p56_p3 = scmp.ne.s32.totalorder %s927_s13, %s923_s12  ;;  %s1304_s20 = smov (%p36_p0, %s34_s20), 0 }
   0xf   : > { %1277 = sst [smem:[#allocation13_spill]] %s1304_s20  ;;  %p1014_p4 = por %p51_p2, %p50_p1 }
  0x10   : > { %p57_p5 = scmp.eq.s32.totalorder %s1002_s18, 0  ;;  %s38_s23 = ssub.s32 %s939_s16, %s1304_s20 }
  0x11   : > { %p138_p6 = scmp.eq.s32.totalorder %s1002_s18, 1  ;;  %p41_p7 = scmp.eq.s32.totalorder %s38_s23, 0 }
  0x12   : > { %p1022_p8 = por %p57_p5, %p56_p3  ;;  %p144_p10 = scmp.eq.s32.totalorder %s603_s19, 1 }
  0x13   : > { %p1026_p9 = por %p138_p6, %p50_p1  ;;  %p649_p13 = scmp.lt.s32.totalorder %s943_s17, 2 }
  0x14   : > { %s1279_s24 = scalar_select %p1022_p8, 1, 0 }
  0x15   : > { %s1280_s25 = scalar_select %p1026_p9, 1, 0 }
  0x16   : > { %s1031_s26 = scalar_select %p41_p7, %s931_s14, %s43_s21  }
  0x17   : > { %p1033_p11 = por %p144_p10, %p56_p3  ;;  %s1268_s28 = sand.u32 1, %s931_s14  }
  0x18   : > { %1281 = sst [smem:[#allocation14_spill]] %s1031_s26  ;;  %s1042_s29 = sshll.u32 %s1268_s28, 3 }
  0x19   : > { %s1282_s27 = scalar_select %p1033_p11, 1, 0 }
  0x1a   : > { %s1045_s30 = sshll.u32 %s939_s16, 7  ;;  %p1049_p0 = pnand %p649_p13, %p1014_p4 }
  0x1b   : > { %s186_s5 = sand.u32 1, %s943_s17   ;;  %s1284_s1 = sld [smem:[#allocation15_spill]] }
  0x1c   : > { %s190_s9 = scalar_lea.vmem [#allocation5], %s1042_s29  ;;  %s1065_s11 = scalar_lea.sflag [#allocation6], %s186_s5 }
  0x1d   : > { %s198_s10 = sshll.u32 %s190_s9, 4  ;;  %p1071_p4 = pneg %p1049_p0  ;;  %s1062_s10 = int_to_ptr.vmem [resolvable:$true] %s198_s10 }
  0x21   : > { %s1058_s8 = scalar_lea.hbm %s1284_s1, %s1045_s30  ;;  %s772_s6 = scalar_lea.hbm %s1284_s1, 256 }
  0x22   : > { %s767_s19 = scalar_lea.hbm %s1058_s8, 128  ;;  %p773_p7 = scmp.lt.u32.totalorder %s1058_s8, %s1284_s1 }
  0x23   : > { %p768_p3 = scmp.ne.s32.totalorder %s1058_s8, %s767_s19  ;;  %p774_p10 = scmp.lt.u32.totalorder %s772_s6, %s767_s19 }
  0x24   : > { %p776_p12 = scmp.lt.u32.totalorder %s767_s19, %s1058_s8 }
  0x25   : > { %p770_p5 = pnand %p1071_p4, %p768_p3  ;;  %p775_p13 = por %p774_p10, %p773_p7 }
  0x27   : > { %p771_p6 = pneg %p770_p5  ;;  %p777_p1 = por %p776_p12, %p775_p13 }
  0x29   : > { %p778_p2 = pnand %p777_p1, %p771_p6 }
  0x2b   : > { %781 = shalt.err (!%p778_p2)
}
  0x2c   : > { %s782_s5 = scalar_lea.vmem %s1062_s10, 128  ;;  %s945_s22 = smov [#allocation5]  }
  0x2d   : > { %p783_p3 = scmp.ne.s32.totalorder %s1062_s10, %s782_s5  ;;  %s787_s23 = sshll.u32 %s945_s22, 4  ;;  %s788_s23 = int_to_ptr.vmem [resolvable:$false] %s787_s23 }
  0x2e   : > { %s789_s7 = scalar_lea.vmem %s788_s23, 256  ;;  %p790_p9 = scmp.lt.s32.totalorder %s1062_s10, %s788_s23 }
  0x2f   : > { %p785_p5 = pnand %p783_p3, %p1071_p4  ;;  %p791_p8 = scmp.lt.s32.totalorder %s789_s7, %s782_s5 }
  0x31   : > { %p786_p11 = pneg %p785_p5  ;;  %p792_p7 = por %p791_p8, %p790_p9 }
  0x33   : > { %p793_p10 = pnand %p792_p7, %p786_p11 }
  0x35   : > { %796 = shalt.err (!%p793_p10)
}
  0x36   : > { %s1269_s19 = smov 32   ;;  %s1271_s6 = smov 2  }
  0x37   : > { %641 = dma.hbm_to_vmem [thread:$0]  (!%p1049_p0), %s1058_s8, 128, %s1062_s10, %s1065_s11, %s1269_s19, %s1269_s19, %s1271_s6  }
  0x38   : > { %p1286_p8 = scmp.lt.s32.totalorder %s943_s17, 3  ;;  %p1287_p9 = scmp.ge.s32.totalorder %s943_s17, 1 }
  0x39   : > { %s1110_s23 = scalar_lea.hbm %s1262_s0, %s1045_s30  ;;  %s168_s7 = scalar_lea.vmem [#allocation2], %s1042_s29 }
  0x3a   : > { %p1102_p11 = pnand %p1287_p9, %p1286_p8  ;;  %s176_s28 = sshll.u32 %s168_s7, 4  ;;  %s1113_s28 = int_to_ptr.vmem [resolvable:$true] %s176_s28 }
  0x3b   : > { %s1119_s19 = scalar_lea.hbm %s1264_s2, %s1045_s30  ;;  %s1289_s6 = sand.u32 1, %s931_s14  }
  0x3c   : > { %s1288_s9 = scalar_select %p1102_p11, 1, 0 }
  0x3d   : > { %s1123_s1 = scalar_lea.sflag [#allocation3], %s1289_s6  ;;  %s797_s20 = scalar_lea.hbm %s1110_s23, 128 }
  0x3e   : > { %p798_p12 = scmp.ne.s32.totalorder %s1110_s23, %s797_s20  ;;  %s802_s16 = scalar_lea.hbm %s1262_s0, 256 }
  0x3f   : > { %p803_p6 = scmp.lt.u32.totalorder %s1110_s23, %s1262_s0  ;;  %p804_p13 = scmp.lt.u32.totalorder %s802_s16, %s797_s20 }
  0x40   : > { %p800_p1 = pnand %p798_p12, %p1071_p4  ;;  %p806_p5 = scmp.lt.u32.totalorder %s797_s20, %s1110_s23 }
  0x41   : > { %p805_p3 = por %p804_p13, %p803_p6 }
  0x42   : > { %p801_p2 = pneg %p800_p1 }
  0x43   : > { %p807_p7 = por %p806_p5, %p805_p3 }
  0x45   : > { %p808_p10 = pnand %p807_p7, %p801_p2 }
  0x47   : > { %811 = shalt.err (!%p808_p10)
}
  0x48   : > { %s812_s30 = scalar_lea.vmem %s1113_s28, 128  ;;  %s948_s6 = smov [#allocation2]  }
  0x49   : > { %p813_p8 = scmp.ne.s32.totalorder %s1113_s28, %s812_s30  ;;  %s817_s8 = sshll.u32 %s948_s6, 4  ;;  %s818_s8 = int_to_ptr.vmem [resolvable:$false] %s817_s8 }
  0x4a   : > { %s819_s26 = scalar_lea.vmem %s818_s8, 256  ;;  %p820_p1 = scmp.lt.s32.totalorder %s1113_s28, %s818_s8 }
  0x4b   : > { %p815_p9 = pnand %p813_p8, %p1071_p4  ;;  %p821_p11 = scmp.lt.s32.totalorder %s819_s26, %s812_s30 }
  0x4d   : > { %p816_p12 = pneg %p815_p9  ;;  %p822_p6 = por %p821_p11, %p820_p1 }
  0x4f   : > { %p823_p13 = pnand %p822_p6, %p816_p12 }
  0x51   : > { %826 = shalt.err (!%p823_p13)
}
  0x52   : > { %s1290_s16 = smov 2   ;;  %s1291_s20 = smov 32  }
  0x53   : > { %638 = dma.hbm_to_vmem [thread:$0]  (!%p1049_p0), %s1110_s23, 128, %s1113_s28, %s1123_s1, %s1291_s20, %s1291_s20, %s1290_s16  }
  0x54   : > { %s212_s10 = scalar_lea.vmem [#allocation7], %s1042_s29  ;;  %s827_s22 = scalar_lea.hbm %s1119_s19, 128 }
  0x55   : > { %s220_s5 = sshll.u32 %s212_s10, 4  ;;  %p828_p11 = scmp.ne.s32.totalorder %s1119_s19, %s827_s22  ;;  %s1151_s5 = int_to_ptr.vmem [resolvable:$true] %s220_s5 }
  0x56   : > { %s832_s6 = scalar_lea.hbm %s1264_s2, 256  ;;  %p833_p5 = scmp.lt.u32.totalorder %s1119_s19, %s1264_s2 }
  0x57   : > { %p830_p2 = pnand %p828_p11, %p1071_p4  ;;  %p834_p7 = scmp.lt.u32.totalorder %s832_s6, %s827_s22 }
  0x58   : > { %p836_p8 = scmp.lt.u32.totalorder %s827_s22, %s1119_s19 }
  0x59   : > { %p831_p3 = pneg %p830_p2  ;;  %p835_p10 = por %p834_p7, %p833_p5 }
  0x5b   : > { %p837_p9 = por %p836_p8, %p835_p10 }
  0x5d   : > { %p838_p12 = pnand %p837_p9, %p831_p3 }
  0x5f   : > { %841 = shalt.err (!%p838_p12)
}
  0x60   : > { %s842_s1 = scalar_lea.vmem %s1151_s5, 128  ;;  %s949_s28 = smov [#allocation7]  }
  0x61   : > { %p843_p1 = scmp.ne.s32.totalorder %s1151_s5, %s842_s1  ;;  %s847_s29 = sshll.u32 %s949_s28, 4  ;;  %s848_s29 = int_to_ptr.vmem [resolvable:$false] %s847_s29 }
  0x62   : > { %s849_s23 = scalar_lea.vmem %s848_s29, 256  ;;  %p850_p11 = scmp.lt.s32.totalorder %s1151_s5, %s848_s29 }
  0x63   : > { %p845_p6 = pnand %p843_p1, %p1071_p4  ;;  %p851_p2 = scmp.lt.s32.totalorder %s849_s23, %s842_s1 }
  0x65   : > { %p846_p13 = pneg %p845_p6  ;;  %p852_p5 = por %p851_p2, %p850_p11 }
  0x67   : > { %p853_p7 = pnand %p852_p5, %p846_p13 }
  0x69   : > { %856 = shalt.err (!%p853_p7)
}
  0x6a   : > { %644 = dma.hbm_to_vmem [thread:$0]  (!%p1049_p0), %s1119_s19, 128, %s1151_s5, %s1065_s11, %s1291_s20, %s1291_s20, %s1290_s16  }
  0x6b   : > { %p1292_p4 = scmp.ne.s32.totalorder %s1288_s9, 0 }
  0x6c   : > { %s1181_s21 = sand.u32 (!%p1292_p4), 1, %s927_s13   ;;  %p1293_p3 = scmp.ne.s32.totalorder (!%p1292_p4), %s1279_s24, 0 }
  0x6d   : > { %232 = sbr.rel (%p1292_p4) target bundleno = 230 (0xe6), region = 32  ;;  %s616_s10 = sshll.u32 (!%p1292_p4), %s1181_s21, 3 }
  0x6e   : > { %s235_s22 = scalar_lea.sflag (!%p1292_p4), [#allocation3], %s1181_s21  ;;  %s1185_s7 = scalar_lea.vmem (!%p1292_p4), [#allocation2], %s616_s10 }
  0x74   : > { %910 = dma.done.wait (%p1293_p3), %s235_s22, 128  }
  0x75   : > { %912 = vsyncadd (%p1293_p3), %s235_s22, 4294967168  ;;  %s243_s4 = sand.u32 1, %s1002_s18   ;;  %s247_s19 = scalar_lea.vmem [#allocation5], %s616_s10 }
  0x76   : > { %s244_s11 = scalar_lea.sflag [#allocation6], %s243_s4 }
  0x77   : > { %914 = dma.done.wait (%p1293_p3), %s244_s11, 256  }
  0x78   : > { %916 = vsyncadd (%p1293_p3), %s244_s11, 4294967040  ;;  %v293_v0 = vld [vmem:[%s247_s19] sm:$0x3]  ;;  %v294_v1 = vld [vmem:[%s247_s19 + $0x2] sm:$0x3]  ;;  %s256_s9 = scalar_lea.vmem [#allocation7], %s616_s10 }
  0x79   : > { %v295_v2 = vld [vmem:[%s247_s19 + $0x4] sm:$0x3]  ;;  %v296_v3 = vld [vmem:[%s247_s19 + $0x6] sm:$0x3]  ;;  %v297_v4 = vld [vmem:[%s256_s9] sm:$0x3] }
  0x7a   : > { %v298_v5 = vld [vmem:[%s256_s9 + $0x2] sm:$0x3]  ;;  %v301_v6 = vadd.f32 1e-08, %v293_v0  ;;  %v302_v7 = vadd.f32 1e-08, %v294_v1 }
  0x7b   : > { %v303_v8 = vadd.f32 1e-08, %v295_v2  ;;  %v299_v9 = vld [vmem:[%s256_s9 + $0x4] sm:$0x3]  ;;  %v304_v10 = vadd.f32 1e-08, %v296_v3 }
  0x7c   : > { %v300_v11 = vld [vmem:[%s256_s9 + $0x6] sm:$0x3]  ;;  %701 = vlog2.f32 %v301_v6  ;;  %v333_v12 = vadd.f32 1e-08, %v297_v4  ;;  %v334_v13 = vadd.f32 1e-08, %v298_v5 }
  0x7d   : > { %703 = vlog2.f32 %v302_v7  ;;  %v289_v14 = vld [vmem:[%s1185_s7] sm:$0x3]  ;;  %v335_v15 = vadd.f32 1e-08, %v299_v9  ;;  %v290_v16 = vld [vmem:[%s1185_s7 + $0x2] sm:$0x3] }
  0x7e   : > { %705 = vlog2.f32 %v303_v8  ;;  %v336_v17 = vadd.f32 1e-08, %v300_v11  ;;  %v291_v18 = vld [vmem:[%s1185_s7 + $0x4] sm:$0x3]  ;;  %v292_v19 = vld [vmem:[%s1185_s7 + $0x6] sm:$0x3] }
  0x7f   : > { %707 = vlog2.f32 %v304_v10  ;;  %v365_v20 = vadd.f32 1e-08, %v289_v14  ;;  %v385_v21 = vsub.f32 1.0, %v289_v14  ;;  %v366_v22 = vadd.f32 1e-08, %v290_v16  ;;  %s619_s18 = sshll.u32 %s1181_s21, 1 }
  0x80   : > { %709 = vlog2.f32 %v333_v12  ;;  %v386_v23 = vsub.f32 1.0, %v290_v16  ;;  %v367_v24 = vadd.f32 1e-08, %v291_v18  ;;  %v387_v25 = vsub.f32 1.0, %v291_v18  ;;  %s288_s24 = scalar_lea.vmem [#allocation8], %s619_s18  ;;  %s621_s20 = sshll.u32 %s935_s15, 5 }
  0x81   : > { %711 = vlog2.f32 %v334_v13  ;;  %v368_v26 = vadd.f32 1e-08, %v292_v19  ;;  %v388_v27 = vsub.f32 1.0, %v292_v19  ;;  %v389_v28 = vadd.f32 1e-08, %v385_v21  ;;  %s474_s16 = sshll.u32 %s288_s24, 4  ;;  %s1215_s6 = scalar_lea.hbm %s1265_s3, %s621_s20  ;;  %s1210_s16 = int_to_ptr.vmem [resolvable:$true] %s474_s16 }
  0x82   : > { %713 = vlog2.f32 %v335_v15  ;;  %v390_v30 = vadd.f32 1e-08, %v386_v23  ;;  %v391_v33 = vadd.f32 1e-08, %v387_v25  ;;  %vm413_vm0 = vcmask 1041408   ;;  %s460_s8 = scalar_lea.sflag [#allocation4], %s1181_s21 }
  0x83   : > { %715 = vlog2.f32 %v336_v17  ;;  %v392_v36 = vadd.f32 1e-08, %v388_v27  ;;  %s857_s26 = scalar_lea.vmem %s1210_s16, 32  ;;  %p1294_p10 = scmp.ne.s32.totalorder %s1280_s25, 0 }
  0x84   : > { %717 = vlog2.f32 %v365_v20  ;;  %p858_p0 = scmp.ne.s32.totalorder %s1210_s16, %s857_s26  ;;  %s950_s15 = smov [#allocation8]  }
  0x85   : > { %719 = vlog2.f32 %v366_v22  ;;  %s861_s1 = sshll.u32 %s950_s15, 4  ;;  %s862_s1 = int_to_ptr.vmem [resolvable:$false] %s861_s1 }
  0x86   : > { %v702_v29 = vpop.eup %701  ;;  %721 = vlog2.f32 %v367_v24  ;;  %p859_p8 = pnand %p858_p0, %p1294_p10  ;;  %s863_s28 = scalar_lea.vmem %s862_s1, 64 }
  0x87   : > { %v704_v31 = vpop.eup %703  ;;  %v306_v32 = vmul.f32 0.6931472, %v702_v29  ;;  %723 = vlog2.f32 %v368_v26  ;;  %p864_p12 = scmp.lt.s32.totalorder %s1210_s16, %s862_s1  ;;  %p865_p1 = scmp.lt.s32.totalorder %s863_s28, %s857_s26 }
  0x88   : > { %v706_v34 = vpop.eup %705  ;;  %v308_v35 = vmul.f32 0.6931472, %v704_v31  ;;  %725 = vlog2.f32 %v389_v28  ;;  %p860_p9 = pneg %p859_p8 }
  0x89   : > { %v708_v37 = vpop.eup %707  ;;  %v310_v38 = vmul.f32 0.6931472, %v706_v34  ;;  %v313_v39 = vsub.f32 0.0, %v306_v32  ;;  %727 = vlog2.f32 %v390_v30  ;;  %p866_p6 = por %p865_p1, %p864_p12 }
  0x8a   : > { %v710_v40 = vpop.eup %709  ;;  %v312_v41 = vmul.f32 0.6931472, %v708_v37  ;;  %v314_v42 = vsub.f32 0.0, %v308_v35  ;;  %729 = vlog2.f32 %v391_v33 }
  0x8b   : > { %v712_v43 = vpop.eup %711  ;;  %v315_v44 = vsub.f32 0.0, %v310_v38  ;;  %v317_v45 = vadd.f32 1e-08, %v313_v39  ;;  %v338_v46 = vmul.f32 0.6931472, %v710_v40  ;;  %731 = vlog2.f32 %v392_v36  ;;  %p867_p13 = pnand %p866_p6, %p860_p9 }
  0x8c   : > { %v714_v47 = vpop.eup %713  ;;  %v316_v48 = vsub.f32 0.0, %v312_v41  ;;  %v318_v49 = vadd.f32 1e-08, %v314_v42  ;;  %v340_v50 = vmul.f32 0.6931472, %v712_v43 }
  0x8d   : > { %v716_v51 = vpop.eup %715  ;;  %v319_v52 = vadd.f32 1e-08, %v315_v44  ;;  %733 = vlog2.f32 %v317_v45  ;;  %v342_v53 = vmul.f32 0.6931472, %v714_v47  ;;  %v345_v54 = vsub.f32 0.0, %v338_v46 }
  0x8e   : > { %v320_v55 = vadd.f32 1e-08, %v316_v48  ;;  %735 = vlog2.f32 %v318_v49  ;;  %v344_v56 = vmul.f32 0.6931472, %v716_v51  ;;  %v346_v57 = vsub.f32 0.0, %v340_v50  ;;  %v718_v58 = vpop.eup %717 }
  0x8f   : > { %737 = vlog2.f32 %v319_v52  ;;  %v347_v59 = vsub.f32 0.0, %v342_v53  ;;  %v349_v60 = vadd.f32 1e-08, %v345_v54  ;;  %v720_v61 = vpop.eup %719  ;;  %v370_v11 = vmul.f32 0.6931472, %v718_v58 }
  0x90   : > { %739 = vlog2.f32 %v320_v55  ;;  %v348_v62 = vsub.f32 0.0, %v344_v56  ;;  %v350_v63 = vadd.f32 1e-08, %v346_v57  ;;  %v722_v0 = vpop.eup %721  ;;  %v372_v14 = vmul.f32 0.6931472, %v720_v61 }
  0x91   : > { %v351_v1 = vadd.f32 1e-08, %v347_v59  ;;  %741 = vlog2.f32 %v349_v60  ;;  %v724_v2 = vpop.eup %723  ;;  %v374_v18 = vmul.f32 0.6931472, %v722_v0 }
  0x92   : > { %v352_v3 = vadd.f32 1e-08, %v348_v62  ;;  %743 = vlog2.f32 %v350_v63  ;;  %v726_v4 = vpop.eup %725  ;;  %v376_v22 = vmul.f32 0.6931472, %v724_v2 }
  0x93   : > { %745 = vlog2.f32 %v351_v1  ;;  %v728_v5 = vpop.eup %727  ;;  %v394_v27 = vmul.f32 0.6931472, %v726_v4 }
  0x94   : > { %747 = vlog2.f32 %v352_v3  ;;  %v730_v6 = vpop.eup %729  ;;  %v396_v32 = vmul.f32 0.6931472, %v728_v5 }
  0x95   : > { %v732_v7 = vpop.eup %731  ;;  %v398_v37 = vmul.f32 0.6931472, %v730_v6 }
  0x96   : > { %v400_v41 = vmul.f32 0.6931472, %v732_v7 }
  0x97   : > { %v734_v8 = vpop.eup %733 }
  0x98   : > { %v736_v9 = vpop.eup %735  ;;  %v322_v10 = vmul.f32 0.6931472, %v734_v8 }
  0x99   : > { %v738_v12 = vpop.eup %737  ;;  %v324_v13 = vmul.f32 0.6931472, %v736_v9 }
  0x9a   : > { %v740_v15 = vpop.eup %739  ;;  %v326_v16 = vmul.f32 0.6931472, %v738_v12  ;;  %v329_v17 = vsub.f32 0.0, %v322_v10 }
  0x9b   : > { %v742_v19 = vpop.eup %741  ;;  %v328_v20 = vmul.f32 0.6931472, %v740_v15  ;;  %v330_v21 = vsub.f32 0.0, %v324_v13 }
  0x9c   : > { %v744_v23 = vpop.eup %743  ;;  %v331_v24 = vsub.f32 0.0, %v326_v16  ;;  %v354_v25 = vmul.f32 0.6931472, %v742_v19  ;;  %v377_v26 = vadd.f32 %v370_v11, %v329_v17 }
  0x9d   : > { %v746_v28 = vpop.eup %745  ;;  %v332_v29 = vsub.f32 0.0, %v328_v20  ;;  %v356_v30 = vmul.f32 0.6931472, %v744_v23  ;;  %v378_v31 = vadd.f32 %v372_v14, %v330_v21 }
  0x9e   : > { %v748_v33 = vpop.eup %747  ;;  %v358_v34 = vmul.f32 0.6931472, %v746_v28  ;;  %v361_v35 = vsub.f32 0.0, %v354_v25  ;;  %v379_v36 = vadd.f32 %v374_v18, %v331_v24  ;;  %v381_v43 = vmul.f32 33.33332, %v377_v26 }
  0x9f   : > { %v360_v38 = vmul.f32 0.6931472, %v748_v33  ;;  %v362_v39 = vsub.f32 0.0, %v356_v30  ;;  %v380_v40 = vadd.f32 %v376_v22, %v332_v29  ;;  %v382_v46 = vmul.f32 33.33332, %v378_v31 }
  0xa0   : > { %v363_v42 = vsub.f32 0.0, %v358_v34  ;;  %v401_v44 = vadd.f32 %v394_v27, %v361_v35  ;;  %v383_v48 = vmul.f32 33.33332, %v379_v36 }
  0xa1   : > { %v364_v45 = vsub.f32 0.0, %v360_v38  ;;  %v402_v47 = vadd.f32 %v396_v32, %v362_v39  ;;  %v384_v51 = vmul.f32 33.33332, %v380_v40 }
  0xa2   : > { %v403_v49 = vadd.f32 %v398_v37, %v363_v42  ;;  %v405_v50 = vmul.f32 33.33332, %v401_v44 }
  0xa3   : > { %v404_v52 = vadd.f32 %v400_v41, %v364_v45  ;;  %v406_v53 = vmul.f32 33.33332, %v402_v47 }
  0xa4   : > { %v407_v54 = vmul.f32 33.33332, %v403_v49  ;;  %v409_v55 = vmax.f32 %v381_v43, %v405_v50 }
  0xa5   : > { %v408_v56 = vmul.f32 33.33332, %v404_v52  ;;  %v410_v57 = vmax.f32 %v382_v46, %v406_v53 }
  0xa6   : > { %v411_v58 = vmax.f32 %v383_v48, %v407_v54  ;;  %v414_v59 = vsel %vm413_vm0, %v409_v55, -inf }
  0xa7   : > { %v412_v60 = vmax.f32 %v384_v51, %v408_v56  ;;  %v415_v61 = vsel %vm413_vm0, %v410_v57, -inf }
  0xa8   : > { %v416_v62 = vsel %vm413_vm0, %v411_v58, -inf  ;;  %v418_v63 = vmax.f32 %v414_v59, %v415_v61 }
  0xa9   : > { %v417_v0 = vsel %vm413_vm0, %v412_v60, -inf }
  0xaa   : > { %v419_v1 = vmax.f32 %v416_v62, %v417_v0 }
  0xac   : > { %v420_v2 = vmax.f32 %v418_v63, %v419_v1 }
  0xae   : > { %v421_v3 = vsub.f32 %v381_v43, %v420_v2  ;;  %v422_v4 = vsub.f32 %v382_v46, %v420_v2  ;;  %v423_v5 = vsub.f32 %v383_v48, %v420_v2  ;;  %v424_v6 = vsub.f32 %v384_v51, %v420_v2 }
  0xaf   : > { %v433_v7 = vsub.f32 %v405_v50, %v420_v2  ;;  %v434_v8 = vsub.f32 %v406_v53, %v420_v2  ;;  %v435_v12 = vsub.f32 %v407_v54, %v420_v2  ;;  %v436_v14 = vsub.f32 %v408_v56, %v420_v2 }
  0xb0   : > { %v425_v9 = vmul.f32 1.442695, %v421_v3  ;;  %v427_v10 = vmul.f32 1.442695, %v422_v4  ;;  %v429_v11 = vmul.f32 1.442695, %v423_v5 }
  0xb1   : > { %v431_v13 = vmul.f32 1.442695, %v424_v6  ;;  %v437_v15 = vmul.f32 1.442695, %v433_v7  ;;  %v439_v16 = vmul.f32 1.442695, %v434_v8 }
  0xb2   : > { %749 = vpow2.f32 %v425_v9  ;;  %v441_v17 = vmul.f32 1.442695, %v435_v12  ;;  %v443_v18 = vmul.f32 1.442695, %v436_v14 }
  0xb3   : > { %751 = vpow2.f32 %v427_v10 }
  0xb4   : > { %753 = vpow2.f32 %v429_v11 }
  0xb5   : > { %755 = vpow2.f32 %v431_v13 }
  0xb6   : > { %757 = vpow2.f32 %v437_v15 }
  0xb7   : > { %759 = vpow2.f32 %v439_v16 }
  0xb8   : > { %761 = vpow2.f32 %v441_v17 }
  0xb9   : > { %763 = vpow2.f32 %v443_v18 }
  0xbc   : > { %v750_v19 = vpop.eup %749 }
  0xbd   : > { %v752_v20 = vpop.eup %751 }
  0xbe   : > { %v754_v21 = vpop.eup %753 }
  0xbf   : > { %v756_v22 = vpop.eup %755 }
  0xc0   : > { %v758_v23 = vpop.eup %757 }
  0xc1   : > { %v760_v24 = vpop.eup %759  ;;  %v445_v25 = vadd.f32 %v758_v23, %v750_v19 }
  0xc2   : > { %v762_v26 = vpop.eup %761  ;;  %v446_v27 = vadd.f32 %v760_v24, %v752_v20 }
  0xc3   : > { %v764_v28 = vpop.eup %763  ;;  %v447_v29 = vadd.f32 %v762_v26, %v754_v21  ;;  %v449_v30 = vsel %vm413_vm0, %v445_v25, 0.0 }
  0xc4   : > { %v448_v31 = vadd.f32 %v764_v28, %v756_v22  ;;  %v450_v32 = vsel %vm413_vm0, %v446_v27, 0.0 }
  0xc5   : > { %v451_v33 = vadd.f32 %v450_v32, %v449_v30  ;;  %v452_v34 = vsel %vm413_vm0, %v447_v29, 0.0 }
  0xc6   : > { %v454_v35 = vsel %vm413_vm0, %v448_v31, 0.0 }
  0xc7   : > { %v453_v36 = vadd.f32 %v452_v34, %v451_v33 }
  0xc9   : > { %v455_v37 = vadd.f32 %v454_v35, %v453_v36 }
  0xcb   : > { %765 = vrcp.f32 %v455_v37 }
  0xd5   : > { %v766_v38 = vpop.eup %765 }
  0xd6   : > { %v457_v39 = vmul.f32 %v766_v38, %v750_v19 }
  0xd8   : > { %458 = vst [vmem:[%s288_s24] sm:$0x3] %v457_v39 }
  0xd9   : > { %870 = shalt.err (!%p867_p13)
}
  0xda   : > { %s871_s29 = scalar_lea.hbm %s1215_s6, 32  ;;  %s875_s10 = scalar_lea.hbm %s1265_s3, 64 }
  0xdb   : > { %p872_p11 = scmp.ne.s32.totalorder %s1215_s6, %s871_s29  ;;  %p876_p7 = scmp.lt.u32.totalorder %s1215_s6, %s1265_s3 }
  0xdc   : > { %p877_p4 = scmp.lt.u32.totalorder %s875_s10, %s871_s29  ;;  %p879_p0 = scmp.lt.u32.totalorder %s871_s29, %s1215_s6 }
  0xdd   : > { %p873_p2 = pnand %p872_p11, %p1294_p10 }
  0xde   : > { %p878_p3 = por %p877_p4, %p876_p7 }
  0xdf   : > { %p874_p5 = pneg %p873_p2 }
  0xe0   : > { %p880_p8 = por %p879_p0, %p878_p3 }
  0xe2   : > { %p881_p9 = pnand %p880_p8, %p874_p5 }
  0xe4   : > { %884 = shalt.err (!%p881_p9)
}
  0xe5   : > { %633 = dma.vmem_to_hbm [thread:$0]  (%p1294_p10), %s1210_s16, 32, %s1215_s6, %s460_s8  }
  0xe6 PF: > { %s486_s4 = sand.u32 1, %s923_s12   ;;  %p1295_p12 = scmp.ne.s32.totalorder %s1282_s27, 0 }
  0xe7   : > { %p1296_p1 = scmp.ge.s32.totalorder %s943_s17, 2  ;;  %s487_s11 = scalar_lea.sflag [#allocation4], %s486_s4 }
  0xe9   : > { %p646_p6 = pnand %p1296_p1, %p1295_p12 }
  0xeb   : > { %918 = dma.done.wait (!%p646_p6), %s487_s11, 32  }
  0xec   : > { %920 = vsyncadd (!%p646_p6), %s487_s11, 4294967264  ;;  %s22_s17 = sadd.s32 1, %s943_s17   ;;  %s1297_s25 = sld [smem:[#allocation14_spill]] }
  0xed   : > { %p19_p13 = scmp.ge.s32.totalorder %s22_s17, 4   ;;  %s1298_s15 = sld [smem:[#allocation12_spill]] }
  0xee   : > { %s1299_s16 = sld [smem:[#allocation13_spill]]  ;;  %s1300_s12 = smov %s927_s13 }
  0xef   : > { %s1301_s13 = smov %s931_s14  ;;  %21 = sbr.rel (!%p19_p13) target bundleno = 10 (0xa), region = 101 }
  0xf2   : > { %s1302_s14 = smov %s1297_s25 }
  0xf6   :  { %492 = vsyncpa [#allocation3], 1 }
  0xf7   :  { %494 = vsyncpa [#allocation3 + $0x1], 1 }
  0xf8   :  { %495 = vsyncpa [#allocation6], 1 }
  0xf9   :  { %497 = vsyncpa [#allocation6 + $0x1], 1 }
  0xfa   :  { %498 = vsyncpa [#allocation4], 1 }
  0xfb   :  { %500 = vsyncpa [#allocation4 + $0x1], 1 }

</bundles_post_ra>
